<compile_context>
chip_gen: v7x
topology: tpu7x:2x2x1
jax: 0.10.0
libtpu: 0.0.40
codegen_flags: <defaults>
</compile_context>

<pallas_src>
import jax
import jax.numpy as jnp
from jax.experimental import pallas as pl
from jax.experimental.pallas import tpu as pltpu

_LANE_CANDIDATES = (2048, 1024, 512, 256, 128)   # lane-dense, multiples of 128
_TARGET_TILE_BYTES = 4 * 1024 * 1024             # ~4 MiB per operand tile
_VMEM_LIMIT_BYTES = 48 * 1024 * 1024             # safe on v5e/v6e (128 MiB) and v7x (64 MiB phys)
_MIN_PALLAS_ELEMS = 1 << 20                      # below this, fused XLA beats pallas_call overhead


def _simple_loss_kernel(scale_ref, pred_ref, targ_ref, out_ref):
    # scale_ref: SMEM (1,) float32 "module" parameter; cast in-kernel (free VPU slot).
    scale = scale_ref[0].astype(pred_ref.dtype)
    out_ref[...] = (pred_ref[...] - targ_ref[...]) * scale


def simple_loss(predict, target, module_param, *, force_pallas=False):
    """Pallas implementation of SimpleLoss.forward: module * (predict - target)."""
    assert predict.shape == target.shape
    assert predict.dtype == target.dtype
    orig_shape = predict.shape
    total = predict.size
    itemsize = jnp.dtype(predict.dtype).itemsize

    # Adaptive lane width: largest candidate dividing the element count,
    # preferring one that yields >= 8 rows (clean (8,128)-aligned blocks).
    divisible = [l for l in _LANE_CANDIDATES if total % l == 0]

    # Fast path: lane-ragged totals (pad/concat would cost an extra full HBM
    # pass; XLA's single fused elementwise pass is already at roofline) and
    # tiny inputs (fixed pallas_call overhead dominates, and a 1-tile grid
    # would leave one v7x TensorCore idle anyway).
    if not divisible or (total < _MIN_PALLAS_ELEMS and not force_pallas):
        scale = module_param.astype(predict.dtype)[0]
        return (predict - target) * scale

    lanes = next((l for l in divisible if total // l >= 8), divisible[0])
    rows = total // lanes                       # exact reshape, zero padding

    # Sublane packing multiple: 8 for f32, 16 for bf16, 32 for int8/fp8.
    sub = max(8, 32 // itemsize)
    tile_rows = max(sub, (_TARGET_TILE_BYTES // (lanes * itemsize)) // sub * sub)
    tile_rows = min(tile_rows, rows)            # full-extent block for short arrays
    n_tiles = pl.cdiv(rows, tile_rows)          # partial last block handled by Pallas

    p2 = predict.reshape(rows, lanes)
    t2 = target.reshape(rows, lanes)

    out = pl.pallas_call(
        _simple_loss_kernel,
        out_shape=jax.ShapeDtypeStruct((rows, lanes), predict.dtype),
        grid_spec=pl.GridSpec(
            grid=(n_tiles,),
            in_specs=[
                pl.BlockSpec(memory_space=pltpu.SMEM),                # scale (1,) f32
                pl.BlockSpec((tile_rows, lanes), lambda i: (i, 0)),   # predict tile
                pl.BlockSpec((tile_rows, lanes), lambda i: (i, 0)),   # target tile
            ],
            out_specs=pl.BlockSpec((tile_rows, lanes), lambda i: (i, 0)),
        ),
        compiler_params=pltpu.CompilerParams(
            dimension_semantics=("parallel",),   # v7x: shard grid over both TCs
            vmem_limit_bytes=_VMEM_LIMIT_BYTES,
        ),
        cost_estimate=pl.CostEstimate(
            flops=2 * total,
            transcendentals=0,
            bytes_accessed=3 * total * itemsize,
        ),
    )(module_param.astype(jnp.float32), p2, t2)

    return out.reshape(orig_shape)


if __name__ == "__main__":
    key = jax.random.PRNGKey(0)
    k1, k2, k3, k4 = jax.random.split(key, 4)

    # Deterministic parameter init: module = tensor([1.0])
    module_param = jnp.array([1.0], dtype=jnp.float32)

    # Small NCHW case. force_pallas=True so the Pallas kernel is exercised even
    # though the default heuristic routes tiny inputs through the fused-XLA path.
    shape_small = (2, 4, 16, 16)
    p_s = jax.random.normal(k1, shape_small, dtype=jnp.float32)
    t_s = jax.random.normal(k2, shape_small, dtype=jnp.float32)
    out_s = simple_loss(p_s, t_s, module_param, force_pallas=True)
    jax.block_until_ready(out_s)
    ref_s = module_param[0] * (p_s - t_s)
    assert out_s.shape == ref_s.shape
    assert jnp.allclose(out_s, ref_s, atol=1e-6), "small-shape mismatch vs reference"

    # Larger case: exercises the row-tiled grid (2 steps, 2048-lane slab) with a
    # partial final block (768 rows, tile_rows=512) and the default heuristics.
    shape_big = (6, 16, 128, 128)
    p_b = jax.random.normal(k3, shape_big, dtype=jnp.float32)
    t_b = jax.random.normal(k4, shape_big, dtype=jnp.float32)
    out_b = simple_loss(p_b, t_b, module_param)
    jax.block_until_ready(out_b)
    ref_b = module_param[0] * (p_b - t_b)
    assert out_b.shape == ref_b.shape
    assert jnp.allclose(out_b, ref_b, atol=1e-6), "big-shape mismatch vs reference"

    print("KERNEL_OK")
</pallas_src>

<mosaic_0001>
module attributes {stable_mosaic.version = 11 : i64} {
  func.func @_simple_loss_kernel(%arg0: i32, %arg1: memref<1xf32, #tpu.memory_space<smem>>, %arg2: memref<8x256xf32, #tpu.memory_space<vmem>>, %arg3: memref<8x256xf32, #tpu.memory_space<vmem>>, %arg4: memref<8x256xf32, #tpu.memory_space<vmem>>) attributes {dimension_semantics = [#tpu.dimension_semantics<parallel>], iteration_bounds = array<i64: 1>, scalar_prefetch = 0 : i64, scratch_operands = 0 : i64, tpu.core_type = #tpu.core_type<tc>, window_params = [{transform_indices = @transform_0, window_bounds = array<i64: 1>}, {transform_indices = @transform_1, window_bounds = array<i64: 8, 256>}, {transform_indices = @transform_2, window_bounds = array<i64: 8, 256>}, {transform_indices = @transform_3, window_bounds = array<i64: 8, 256>}]} {
    %c0 = arith.constant 0 : index
    %0 = memref.load %arg1[%c0] : memref<1xf32, #tpu.memory_space<smem>>
    %c0_0 = arith.constant 0 : index
    %c0_1 = arith.constant 0 : index
    %1 = vector.load %arg2[%c0_0, %c0_1] : memref<8x256xf32, #tpu.memory_space<vmem>>, vector<8x256xf32>
    %c0_2 = arith.constant 0 : index
    %c0_3 = arith.constant 0 : index
    %2 = vector.load %arg3[%c0_2, %c0_3] : memref<8x256xf32, #tpu.memory_space<vmem>>, vector<8x256xf32>
    %3 = arith.subf %1, %2 : vector<8x256xf32>
    %4 = vector.broadcast %0 : f32 to vector<8x256xf32>
    %5 = arith.mulf %3, %4 : vector<8x256xf32>
    %c0_4 = arith.constant 0 : index
    %c0_5 = arith.constant 0 : index
    %6 = vector.load %arg4[%c0_4, %c0_5] : memref<8x256xf32, #tpu.memory_space<vmem>>, vector<8x256xf32>
    tpu.vector_store %arg4[%c0_4, %c0_5], %5 {strides = array<i32>} : memref<8x256xf32, #tpu.memory_space<vmem>>, vector<8x256xf32>,
    return
  }
  func.func @transform_0(%arg0: i32) -> i32 {
    %c0_i32 = arith.constant 0 : i32
    %c0_i32_0 = arith.constant 0 : i32
    return %c0_i32 : i32
  }
  func.func @transform_1(%arg0: i32) -> (i32, i32) {
    %c0_i32 = arith.constant 0 : i32
    %c0_i32_0 = arith.constant 0 : i32
    return %arg0, %c0_i32 : i32, i32
  }
  func.func @transform_2(%arg0: i32) -> (i32, i32) {
    %c0_i32 = arith.constant 0 : i32
    %c0_i32_0 = arith.constant 0 : i32
    return %arg0, %c0_i32 : i32, i32
  }
  func.func @transform_3(%arg0: i32) -> (i32, i32) {
    %c0_i32 = arith.constant 0 : i32
    %c0_i32_0 = arith.constant 0 : i32
    return %arg0, %c0_i32 : i32, i32
  }
}

</mosaic_0001>

<bundles_post_ra>
// kernel: tpu_custom_call.1
= control target key start
LH: loop header
LB: loop body
LE: loop exit
PB: predicated region body
PF: predicated region fallthrough
CT: control target
= control target key end

     0   :  { %9 = vsyncpa [#allocation4], 0  ;;  %s205_s0 = inlined_call_operand.<no memory space> [shape: f32[1], index: 0, kind: input, shape index: {}]   ;;  %s206_s1 = inlined_call_operand.hbm [shape: f32[8,256], index: 1, kind: input, shape index: {}]   ;;  %s207_s2 = inlined_call_operand.hbm [shape: f32[8,256], index: 2, kind: input, shape index: {}]   ;;  %s208_s3 = inlined_call_operand.hbm [shape: f32[8,256], index: 3, kind: output, shape index: {}]  }
   0x1   :  { %10 = vsyncpa [#allocation7], 0 }
   0x2   :  { %11 = vsyncpa [#allocation5], 0  ;;  %s143_s12 = smov [#allocation3]   ;;  %s144_s14 = smov [#allocation6]  }
   0x3   :  { %s20_s13 = sshll.u32 %s143_s12, 4  ;;  %s30_s15 = sshll.u32 %s144_s14, 4  ;;  %s21_s13 = int_to_ptr.vmem [resolvable:$true] %s20_s13  ;;  %s31_s15 = int_to_ptr.vmem [resolvable:$true] %s30_s15 }
   0x4   :  { %s71_s18 = scalar_lea.hbm %s206_s1, 256 }
   0x5   :  { %p72_p0 = scmp.ne.s32.totalorder %s206_s1, %s71_s18  ;;  %p75_p1 = scmp.lt.u32.totalorder %s71_s18, %s206_s1 }
   0x7   :  { %p77_p2 = pnand %p75_p1, %p72_p0 }
   0x9   :  { %80 = shalt.err (!%p77_p2)
}
   0xa   :  { %s81_s23 = scalar_lea.vmem %s21_s13, 256  ;;  %p86_p4 = scmp.lt.s32.totalorder %s21_s13, %s21_s13 }
   0xb   :  { %p82_p3 = scmp.ne.s32.totalorder %s21_s13, %s81_s23  ;;  %p87_p5 = scmp.lt.s32.totalorder %s81_s23, %s81_s23 }
   0xd   :  { %p88_p6 = por %p87_p5, %p86_p4 }
   0xf   :  { %p89_p7 = pnand %p88_p6, %p82_p3 }
  0x11   :  { %92 = shalt.err (!%p89_p7)
}
  0x12   :  { %23 = dma.hbm_to_vmem [thread:$0]  %s206_s1, 256, %s21_s13, [#allocation4]  }
  0x13   :  { %s93_s28 = scalar_lea.hbm %s207_s2, 256 }
  0x14   :  { %p94_p8 = scmp.ne.s32.totalorder %s207_s2, %s93_s28  ;;  %p97_p9 = scmp.lt.u32.totalorder %s93_s28, %s207_s2 }
  0x16   :  { %p99_p10 = pnand %p97_p9, %p94_p8 }
  0x18   :  { %102 = shalt.err (!%p99_p10)
}
  0x19   :  { %s103_s6 = scalar_lea.vmem %s31_s15, 256  ;;  %p108_p12 = scmp.lt.s32.totalorder %s31_s15, %s31_s15 }
  0x1a   :  { %p104_p11 = scmp.ne.s32.totalorder %s31_s15, %s103_s6  ;;  %p109_p13 = scmp.lt.s32.totalorder %s103_s6, %s103_s6 }
  0x1c   :  { %p110_p0 = por %p109_p13, %p108_p12 }
  0x1e   :  { %p111_p1 = pnand %p110_p0, %p104_p11 }
  0x20   :  { %114 = shalt.err (!%p111_p1)
}
  0x21   :  { %33 = dma.hbm_to_vmem [thread:$0]  %s207_s2, 256, %s31_s15, [#allocation7]  }
  0x22   :  { %137 = dma.done.wait [#allocation4], 256  }
  0x23   :  { %138 = vsyncadd [#allocation4], 4294967040 }
  0x24   :  { %139 = dma.done.wait [#allocation7], 256  }
  0x25   :  { %140 = vsyncadd [#allocation7], 4294967040  ;;  %v41_v0 = vld [vmem:[#allocation3] sm:$0xff]  ;;  %v43_v1 = vld [vmem:[#allocation6] sm:$0xff]  ;;  %v47_v2 = vstv %s205_s0  ;;  %s145_s10 = smov [#allocation8]  }
  0x26   :  { %v42_v3 = vld [vmem:[#allocation3 + $0x8] sm:$0xff]  ;;  %v45_v4 = vsub.f32 %v41_v0, %v43_v1  ;;  %v44_v5 = vld [vmem:[#allocation6 + $0x8] sm:$0xff]  ;;  %s58_s11 = sshll.u32 %s145_s10, 4  ;;  %s59_s11 = int_to_ptr.vmem [resolvable:$true] %s58_s11 }
  0x27   :  { %v46_v6 = vsub.f32 %v42_v3, %v44_v5  ;;  %s115_s2 = scalar_lea.vmem %s59_s11, 256  ;;  %p120_p3 = scmp.lt.s32.totalorder %s59_s11, %s59_s11 }
  0x28   :  { %v48_v7 = vmul.f32 %v47_v2, %v45_v4  ;;  %p116_p2 = scmp.ne.s32.totalorder %s59_s11, %s115_s2  ;;  %p121_p4 = scmp.lt.s32.totalorder %s115_s2, %s115_s2 }
  0x29   :  { %v49_v8 = vmul.f32 %v47_v2, %v46_v6 }
  0x2a   :  { %50 = vst [vmem:[#allocation8] sm:$0xff] %v48_v7  ;;  %p122_p5 = por %p121_p4, %p120_p3 }
  0x2b   :  { %51 = vst [vmem:[#allocation8 + $0x8] sm:$0xff] %v49_v8 }
  0x2c   :  { %p123_p6 = pnand %p122_p5, %p116_p2 }
  0x2e   :  { %126 = shalt.err (!%p123_p6)
}
  0x2f   :  { %s127_s13 = scalar_lea.hbm %s208_s3, 256 }
  0x30   :  { %p128_p7 = scmp.ne.s32.totalorder %s208_s3, %s127_s13  ;;  %p131_p8 = scmp.lt.u32.totalorder %s127_s13, %s208_s3 }
  0x32   :  { %p133_p9 = pnand %p131_p8, %p128_p7 }
  0x34   :  { %136 = shalt.err (!%p133_p9)
}
  0x35   :  { %61 = dma.vmem_to_hbm [thread:$0]  %s59_s11, 256, %s208_s3, [#allocation5]  }
  0x36   :  { %141 = dma.done.wait [#allocation5], 256  }
  0x37   :  { %142 = vsyncadd [#allocation5], 4294967040 }
  0x38   :  { %65 = vsyncpa [#allocation4], 1 }
  0x39   :  { %66 = vsyncpa [#allocation7], 1 }
  0x3a   :  { %67 = vsyncpa [#allocation5], 1 }

</bundles_post_ra>
